<compile_context>
chip_gen: v5e
topology: v5e:2x2
jax: 0.10.0
libtpu: 0.0.40
codegen_flags: <defaults>
</compile_context>

<pallas_src>
import functools
import math

import jax
import jax.numpy as jnp
from jax import lax
from jax.experimental import pallas as pl
from jax.experimental.pallas import tpu as pltpu


# ------------------------- flash-attention kernel --------------------------

def mha_flash_kernel(xq_ref, xkv_ref, wq_ref, wk_ref, wv_ref, o_ref,
                     q_scr, m_scr, l_scr, acc_scr, k_cache, v_cache,
                     *, causal, tq, tk):
    """One grid step = (batch b, head h, q-tile qi, kv-tile ki).

    xq_ref:   (1, tq, D)   query rows of x
    xkv_ref:  (1, tk, D)   key/value rows of x (only DMA'd while qi == 0)
    wq/wk/wv: (1, D, Dh)   per-head projection weights (wq pre-scaled by 1/sqrt(Dh))
    o_ref:    (1, 1, tq, Dh) this head's output tile (written once at ki == nk-1)
    scratch:  q_scr (tq,Dh) compute dtype, m/l (tq,1) f32, acc (tq,Dh) f32,
              k_cache/v_cache (N, Dh) compute dtype (per-head projected K/V)
    """
    qi = pl.program_id(2)
    ki = pl.program_id(3)
    nk = pl.num_programs(3)

    # ---- fill the per-head K/V cache once (first q-tile only) ----
    @pl.when(qi == 0)
    def _():
        xkv = xkv_ref[0]
        row0 = pl.multiple_of(ki * tk, tk)
        k_cache[pl.ds(row0, tk), :] = jnp.dot(
            xkv, wk_ref[0], preferred_element_type=jnp.float32).astype(k_cache.dtype)
        v_cache[pl.ds(row0, tk), :] = jnp.dot(
            xkv, wv_ref[0], preferred_element_type=jnp.float32).astype(v_cache.dtype)

    # ---- per-(b, h, q-tile) init: project q once, reset online-softmax state ----
    @pl.when(ki == 0)
    def _():
        q_scr[...] = jnp.dot(xq_ref[0], wq_ref[0],
                             preferred_element_type=jnp.float32).astype(q_scr.dtype)
        m_scr[...] = jnp.full_like(m_scr, -jnp.inf)
        l_scr[...] = jnp.zeros_like(l_scr)
        acc_scr[...] = jnp.zeros_like(acc_scr)

    # ---- one kv tile of online-softmax attention, reading the VMEM K/V cache ----
    def compute_tile():
        row0 = pl.multiple_of(ki * tk, tk)
        k = k_cache[pl.ds(row0, tk), :]
        v = v_cache[pl.ds(row0, tk), :]
        # scores: contract over Dh directly (no explicit K transpose)
        s = lax.dot_general(q_scr[...], k,
                            dimension_numbers=(((1,), (1,)), ((), ())),
                            preferred_element_type=jnp.float32)          # (tq, tk)
        if causal:
            r = qi * tq + lax.broadcasted_iota(jnp.int32, (tq, tk), 0)
            c = ki * tk + lax.broadcasted_iota(jnp.int32, (tq, tk), 1)
            s = jnp.where(c > r, jnp.finfo(jnp.float32).min, s)
        m_prev = m_scr[...]
        m_new = jnp.maximum(m_prev, s.max(axis=-1, keepdims=True))
        alpha = jnp.exp(m_prev - m_new)
        p = jnp.exp(s - m_new)
        l_scr[...] = alpha * l_scr[...] + p.sum(axis=-1, keepdims=True)
        acc_scr[...] = alpha * acc_scr[...] + jnp.dot(
            p.astype(v.dtype), v, preferred_element_type=jnp.float32)
        m_scr[...] = m_new

    if causal:
        # skip kv tiles that are entirely in the future of this q tile
        pl.when(ki * tk <= qi * tq + (tq - 1))(compute_tile)
    else:
        compute_tile()

    # ---- finalize: normalize and store this head's output tile once ----
    @pl.when(ki == nk - 1)
    def _():
        # exact reciprocal so the demo's strict 1e-5 f32 check holds;
        # use approx=True (EUP fast path) in production.
        inv_l = pl.reciprocal(l_scr[...], approx=False)
        o_ref[0, 0] = (acc_scr[...] * inv_l).astype(o_ref.dtype)


# ------------------------- out-projection kernel ---------------------------

def out_proj_kernel(x_ref, w_ref, o_ref):
    # single full-depth contraction (K = H*Dh) -> good MXU depth on v6e/v7x
    o_ref[0] = jnp.dot(x_ref[0], w_ref[...],
                       preferred_element_type=jnp.float32).astype(o_ref.dtype)


def out_projection(x, w_out, *, row_block=256):
    """x: (B, N, HD), w_out: (dim, HD) (PyTorch layout). Returns x @ w_out.T."""
    B, N, HD = x.shape
    dim = w_out.shape[0]
    tr = min(row_block, N)
    assert N % tr == 0
    w_t = jnp.transpose(w_out).astype(x.dtype)  # (HD, dim), trace-time
    return pl.pallas_call(
        out_proj_kernel,
        out_shape=jax.ShapeDtypeStruct((B, N, dim), x.dtype),
        grid_spec=pltpu.PrefetchScalarGridSpec(
            num_scalar_prefetch=0,
            grid=(B, N // tr),
            in_specs=[pl.BlockSpec((1, tr, HD), lambda b, i: (b, i, 0)),
                      pl.BlockSpec((HD, dim), lambda b, i: (0, 0))],
            out_specs=pl.BlockSpec((1, tr, dim), lambda b, i: (b, i, 0)),
        ),
        compiler_params=pltpu.CompilerParams(
            dimension_semantics=("parallel", "parallel")),
    )(x, w_t)


# ------------------------------ JAX wrapper --------------------------------

def multi_head_attention(x, w_qkv, w_out, *, dim, n_heads, inner_dim, causal=False,
                         q_block=256, kv_block=256):
    """x: (B, N, dim); w_qkv: (3*H*Dh, dim); w_out: (dim, H*Dh) (PyTorch layouts)."""
    B, N, D = x.shape
    assert D == dim
    HD = n_heads * inner_dim

    tq = min(q_block, N)
    tk = min(kv_block, N)
    # TODO(synk): ragged N (not a multiple of the tile) needs key-length masking.
    assert N % tq == 0 and N % tk == 0
    nq, nk = N // tq, N // tk

    # Per-head weight slices, prepared once at trace time; 1/sqrt(Dh) folded into Wq.
    scale = 1.0 / math.sqrt(inner_dim)
    wq_h = (jnp.transpose(w_qkv[0 * HD:1 * HD].reshape(n_heads, inner_dim, dim),
                          (0, 2, 1)) * scale).astype(x.dtype)
    wk_h = jnp.transpose(w_qkv[1 * HD:2 * HD].reshape(n_heads, inner_dim, dim),
                         (0, 2, 1)).astype(x.dtype)
    wv_h = jnp.transpose(w_qkv[2 * HD:3 * HD].reshape(n_heads, inner_dim, dim),
                         (0, 2, 1)).astype(x.dtype)

    kernel = functools.partial(mha_flash_kernel, causal=causal, tq=tq, tk=tk)

    # xkv DMA only needed while qi == 0 (cache fill); park the block index afterwards
    # so Pallas skips the copy entirely for qi > 0.
    def xkv_index(b, h, qi, ki):
        return (b, jnp.where(qi == 0, ki, nk - 1), 0)

    o_heads = pl.pallas_call(
        kernel,
        out_shape=jax.ShapeDtypeStruct((B, n_heads, N, inner_dim), x.dtype),
        grid_spec=pltpu.PrefetchScalarGridSpec(
            num_scalar_prefetch=0,
            grid=(B, n_heads, nq, nk),
            in_specs=[
                pl.BlockSpec((1, tq, D), lambda b, h, qi, ki: (b, qi, 0)),         # x (q rows)
                pl.BlockSpec((1, tk, D), xkv_index),                               # x (kv rows)
                pl.BlockSpec((1, D, inner_dim), lambda b, h, qi, ki: (h, 0, 0)),   # Wq[h]*scale
                pl.BlockSpec((1, D, inner_dim), lambda b, h, qi, ki: (h, 0, 0)),   # Wk[h]
                pl.BlockSpec((1, D, inner_dim), lambda b, h, qi, ki: (h, 0, 0)),   # Wv[h]
            ],
            out_specs=pl.BlockSpec((1, 1, tq, inner_dim),
                                   lambda b, h, qi, ki: (b, h, qi, 0)),
            scratch_shapes=[
                pltpu.VMEM((tq, inner_dim), x.dtype),       # pre-scaled q (compute dtype)
                pltpu.VMEM((tq, 1), jnp.float32),           # running max
                pltpu.VMEM((tq, 1), jnp.float32),           # running sum
                pltpu.VMEM((tq, inner_dim), jnp.float32),   # per-head accumulator
                pltpu.VMEM((N, inner_dim), x.dtype),        # per-head projected K cache
                pltpu.VMEM((N, inner_dim), x.dtype),        # per-head projected V cache
            ],
        ),
        compiler_params=pltpu.CompilerParams(
            # B and H are independent (per-head output blocks, per-core scratch) ->
            # parallel; qi must stay arbitrary (K/V cache filled at qi == 0), ki is
            # the online-softmax reduction.
            dimension_semantics=("parallel", "parallel", "arbitrary", "arbitrary"),
            # <= 48 MiB: fits v7x's 64 MiB physical VMEM; raise toward ~96-112 MiB on
            # v5e/v6e (128 MiB) together with 256-wide tiles.
            vmem_limit_bytes=48 * 1024 * 1024,
        ),
    )(x, x, wq_h, wk_h, wv_h)

    # Merge heads (pure layout, handled by XLA outside the kernel).
    o = o_heads.transpose(0, 2, 1, 3).reshape(B, N, HD)
    if HD != dim:
        o = out_projection(o, w_out)   # real out_proj: one full-depth GEMM
    return o


# --------------------------- pure-JAX reference ----------------------------

def reference_mha(x, w_qkv, w_out, *, dim, n_heads, inner_dim, causal=False):
    B, N, D = x.shape
    HD = n_heads * inner_dim
    qkv = x @ w_qkv.T                                        # (B, N, 3*HD)
    q, k, v = jnp.split(qkv, 3, axis=-1)
    split_heads = lambda t: t.reshape(B, N, n_heads, inner_dim).transpose(0, 2, 1, 3)
    q, k, v = map(split_heads, (q, k, v))                    # (B, H, N, Dh)
    s = jnp.einsum('bhqd,bhkd->bhqk', q, k) / math.sqrt(inner_dim)
    if causal:
        fill = jnp.finfo(x.dtype).min
        row = lax.broadcasted_iota(jnp.int32, (N, N), 0)
        col = lax.broadcasted_iota(jnp.int32, (N, N), 1)
        s = s + jnp.where(col > row, fill, 0.0)
    p = jax.nn.softmax(s, axis=-1)
    o = jnp.einsum('bhqk,bhkd->bhqd', p, v)                  # (B, H, N, Dh)
    o = o.transpose(0, 2, 1, 3).reshape(B, N, HD)
    if HD != dim:
        o = o @ w_out.T
    return o


# ---------------------------------- main -----------------------------------

if __name__ == "__main__":
    key = jax.random.PRNGKey(0)

    B, dim, n_heads = 2, 32, 4

    def init_linear(k, out_f, in_f):
        bound = 1.0 / math.sqrt(in_f)
        return jax.random.uniform(k, (out_f, in_f), jnp.float32, -bound, bound)

    # (N, inner_dim [None -> dim//n_heads], causal, q_block, kv_block)
    configs = [
        (8,  None, False, 128, 128),   # out_proj skipped, single tile
        (8,  16,   True,  128, 128),   # real out_proj, causal, single tile
        (32, None, True,  8,   8),     # multi-tile: cache reuse + causal tile skip
        (32, 16,   False, 8,   8),     # multi-tile, real out_proj
    ]

    ok = True
    for N, inner_dim, causal, qb, kb in configs:
        if inner_dim is None:
            inner_dim = dim // n_heads
        HD = n_heads * inner_dim
        k1, k2, k3, key = jax.random.split(key, 4)
        w_qkv = init_linear(k1, 3 * HD, dim)       # qkv_proj.weight  (3*H*Dh, dim)
        w_out = init_linear(k2, dim, HD)           # out_proj.weight  (dim, H*Dh)
        x = jax.random.normal(k3, (B, N, dim), jnp.float32)

        out = multi_head_attention(x, w_qkv, w_out, dim=dim, n_heads=n_heads,
                                   inner_dim=inner_dim, causal=causal,
                                   q_block=qb, kv_block=kb)
        out = jax.block_until_ready(out)

        ref = reference_mha(x, w_qkv, w_out, dim=dim, n_heads=n_heads,
                            inner_dim=inner_dim, causal=causal)
        ok = ok and bool(jnp.allclose(out, ref, atol=1e-5, rtol=1e-5))
        assert out.shape == (B, N, dim)

    if ok:
        print("KERNEL_OK")
    else:
        print("KERNEL_MISMATCH")
</pallas_src>

<mosaic_0001>
module attributes {stable_mosaic.version = 11 : i64} {
  func.func @mha_flash_kernel(%arg0: i32, %arg1: i32, %arg2: i32, %arg3: i32, %arg4: memref<1x8x32xf32, #tpu.memory_space<vmem>>, %arg5: memref<1x8x32xf32, #tpu.memory_space<vmem>>, %arg6: memref<1x32x8xf32, #tpu.memory_space<vmem>>, %arg7: memref<1x32x8xf32, #tpu.memory_space<vmem>>, %arg8: memref<1x32x8xf32, #tpu.memory_space<vmem>>, %arg9: memref<1x1x8x8xf32, #tpu.memory_space<vmem>>, %arg10: memref<8x8xf32, #tpu.memory_space<vmem>>, %arg11: memref<8x1xf32, #tpu.memory_space<vmem>>, %arg12: memref<8x1xf32, #tpu.memory_space<vmem>>, %arg13: memref<8x8xf32, #tpu.memory_space<vmem>>, %arg14: memref<8x8xf32, #tpu.memory_space<vmem>>, %arg15: memref<8x8xf32, #tpu.memory_space<vmem>>) attributes {dimension_semantics = [#tpu.dimension_semantics<parallel>, #tpu.dimension_semantics<parallel>, #tpu.dimension_semantics<arbitrary>, #tpu.dimension_semantics<arbitrary>], iteration_bounds = array<i64: 2, 4, 1, 1>, scalar_prefetch = 0 : i64, scratch_operands = 6 : i64, tpu.core_type = #tpu.core_type<tc>, window_params = [{transform_indices = @transform_0, window_bounds = array<i64: 1, 8, 32>}, {transform_indices = @transform_1, window_bounds = array<i64: 1, 8, 32>}, {transform_indices = @transform_2, window_bounds = array<i64: 1, 32, 8>}, {transform_indices = @transform_3, window_bounds = array<i64: 1, 32, 8>}, {transform_indices = @transform_4, window_bounds = array<i64: 1, 32, 8>}, {transform_indices = @transform_5, window_bounds = array<i64: 1, 1, 8, 8>}]} {
    %c0_i32 = arith.constant 0 : i32
    %0 = arith.cmpi eq, %arg2, %c0_i32 : i32
    %1 = arith.extui %0 : i1 to i32
    %c0_i32_0 = arith.constant 0 : i32
    %2 = arith.cmpi ne, %1, %c0_i32_0 : i32
    scf.if %2 {
      %c0_23 = arith.constant 0 : index
      %c0_24 = arith.constant 0 : index
      %c0_25 = arith.constant 0 : index
      %39 = vector.load %arg5[%c0_23, %c0_24, %c0_25] : memref<1x8x32xf32, #tpu.memory_space<vmem>>, vector<1x8x32xf32>
      %40 = vector.shape_cast %39 : vector<1x8x32xf32> to vector<8x32xf32>
      %c8_i32_26 = arith.constant 8 : i32
      %41 = arith.muli %arg3, %c8_i32_26 : i32
      %42 = tpu.assume_multiple %41, 8 : i32
      %c0_27 = arith.constant 0 : index
      %c0_28 = arith.constant 0 : index
      %c0_29 = arith.constant 0 : index
      %43 = vector.load %arg7[%c0_27, %c0_28, %c0_29] : memref<1x32x8xf32, #tpu.memory_space<vmem>>, vector<1x32x8xf32>
      %44 = vector.shape_cast %43 : vector<1x32x8xf32> to vector<32x8xf32>
      %cst_30 = arith.constant dense<0.000000e+00> : vector<8x8xf32>
      %45 = tpu.matmul %40, %44, %cst_30 {dimension_numbers = #tpu.dot_dimension_numbers<[1], [0], [0], [1], [0, 0, 1, 1], [], []>} : vector<8x32xf32>, vector<32x8xf32>, vector<8x8xf32> -> vector<8x8xf32>
      %46 = arith.index_cast %42 : i32 to index
      %c0_31 = arith.constant 0 : index
      %47 = vector.load %arg14[%46, %c0_31] : memref<8x8xf32, #tpu.memory_space<vmem>>, vector<8x8xf32>
      tpu.vector_store %arg14[%46, %c0_31], %45 {strides = array<i32>} : memref<8x8xf32, #tpu.memory_space<vmem>>, vector<8x8xf32>,
      %c0_32 = arith.constant 0 : index
      %c0_33 = arith.constant 0 : index
      %c0_34 = arith.constant 0 : index
      %48 = vector.load %arg8[%c0_32, %c0_33, %c0_34] : memref<1x32x8xf32, #tpu.memory_space<vmem>>, vector<1x32x8xf32>
      %49 = vector.shape_cast %48 : vector<1x32x8xf32> to vector<32x8xf32>
      %cst_35 = arith.constant dense<0.000000e+00> : vector<8x8xf32>
      %50 = tpu.matmul %40, %49, %cst_35 {dimension_numbers = #tpu.dot_dimension_numbers<[1], [0], [0], [1], [0, 0, 1, 1], [], []>} : vector<8x32xf32>, vector<32x8xf32>, vector<8x8xf32> -> vector<8x8xf32>
      %51 = arith.index_cast %42 : i32 to index
      %c0_36 = arith.constant 0 : index
      %52 = vector.load %arg15[%51, %c0_36] : memref<8x8xf32, #tpu.memory_space<vmem>>, vector<8x8xf32>
      tpu.vector_store %arg15[%51, %c0_36], %50 {strides = array<i32>} : memref<8x8xf32, #tpu.memory_space<vmem>>, vector<8x8xf32>,
    } else {
    }
    %c0_i32_1 = arith.constant 0 : i32
    %3 = arith.cmpi eq, %arg3, %c0_i32_1 : i32
    %4 = arith.extui %3 : i1 to i32
    %c0_i32_2 = arith.constant 0 : i32
    %5 = arith.cmpi ne, %4, %c0_i32_2 : i32
    scf.if %5 {
      %c0_23 = arith.constant 0 : index
      %c0_24 = arith.constant 0 : index
      %c0_25 = arith.constant 0 : index
      %39 = vector.load %arg4[%c0_23, %c0_24, %c0_25] : memref<1x8x32xf32, #tpu.memory_space<vmem>>, vector<1x8x32xf32>
      %40 = vector.shape_cast %39 : vector<1x8x32xf32> to vector<8x32xf32>
      %c0_26 = arith.constant 0 : index
      %c0_27 = arith.constant 0 : index
      %c0_28 = arith.constant 0 : index
      %41 = vector.load %arg6[%c0_26, %c0_27, %c0_28] : memref<1x32x8xf32, #tpu.memory_space<vmem>>, vector<1x32x8xf32>
      %42 = vector.shape_cast %41 : vector<1x32x8xf32> to vector<32x8xf32>
      %cst_29 = arith.constant dense<0.000000e+00> : vector<8x8xf32>
      %43 = tpu.matmul %40, %42, %cst_29 {dimension_numbers = #tpu.dot_dimension_numbers<[1], [0], [0], [1], [0, 0, 1, 1], [], []>} : vector<8x32xf32>, vector<32x8xf32>, vector<8x8xf32> -> vector<8x8xf32>
      %c0_30 = arith.constant 0 : index
      %c0_31 = arith.constant 0 : index
      %44 = vector.load %arg10[%c0_30, %c0_31] : memref<8x8xf32, #tpu.memory_space<vmem>>, vector<8x8xf32>
      tpu.vector_store %arg10[%c0_30, %c0_31], %43 {strides = array<i32>} : memref<8x8xf32, #tpu.memory_space<vmem>>, vector<8x8xf32>,
      %cst_32 = arith.constant 0xFF800000 : f32
      %45 = vector.broadcast %cst_32 : f32 to vector<8x1xf32>
      %c0_33 = arith.constant 0 : index
      %c0_34 = arith.constant 0 : index
      %46 = vector.load %arg11[%c0_33, %c0_34] : memref<8x1xf32, #tpu.memory_space<vmem>>, vector<8x1xf32>
      tpu.vector_store %arg11[%c0_33, %c0_34], %45 {strides = array<i32>} : memref<8x1xf32, #tpu.memory_space<vmem>>, vector<8x1xf32>,
      %cst_35 = arith.constant 0.000000e+00 : f32
      %47 = vector.broadcast %cst_35 : f32 to vector<8x1xf32>
      %c0_36 = arith.constant 0 : index
      %c0_37 = arith.constant 0 : index
      %48 = vector.load %arg12[%c0_36, %c0_37] : memref<8x1xf32, #tpu.memory_space<vmem>>, vector<8x1xf32>
      tpu.vector_store %arg12[%c0_36, %c0_37], %47 {strides = array<i32>} : memref<8x1xf32, #tpu.memory_space<vmem>>, vector<8x1xf32>,
      %cst_38 = arith.constant 0.000000e+00 : f32
      %49 = vector.broadcast %cst_38 : f32 to vector<8x8xf32>
      %c0_39 = arith.constant 0 : index
      %c0_40 = arith.constant 0 : index
      %50 = vector.load %arg13[%c0_39, %c0_40] : memref<8x8xf32, #tpu.memory_space<vmem>>, vector<8x8xf32>
      tpu.vector_store %arg13[%c0_39, %c0_40], %49 {strides = array<i32>} : memref<8x8xf32, #tpu.memory_space<vmem>>, vector<8x8xf32>,
    } else {
    }
    %c8_i32 = arith.constant 8 : i32
    %6 = arith.muli %arg3, %c8_i32 : i32
    %7 = tpu.assume_multiple %6, 8 : i32
    %8 = arith.index_cast %7 : i32 to index
    %c0 = arith.constant 0 : index
    %9 = vector.load %arg14[%8, %c0] : memref<8x8xf32, #tpu.memory_space<vmem>>, vector<8x8xf32>
    %10 = arith.index_cast %7 : i32 to index
    %c0_3 = arith.constant 0 : index
    %11 = vector.load %arg15[%10, %c0_3] : memref<8x8xf32, #tpu.memory_space<vmem>>, vector<8x8xf32>
    %c0_4 = arith.constant 0 : index
    %c0_5 = arith.constant 0 : index
    %12 = vector.load %arg10[%c0_4, %c0_5] : memref<8x8xf32, #tpu.memory_space<vmem>>, vector<8x8xf32>
    %cst = arith.constant dense<0.000000e+00> : vector<8x8xf32>
    %13 = tpu.matmul %12, %9, %cst {dimension_numbers = #tpu.dot_dimension_numbers<[1], [1], [0], [0], [0, 0, 1, 0], [], []>} : vector<8x8xf32>, vector<8x8xf32>, vector<8x8xf32> -> vector<8x8xf32>
    %c0_6 = arith.constant 0 : index
    %c0_7 = arith.constant 0 : index
    %14 = vector.load %arg11[%c0_6, %c0_7] : memref<8x1xf32, #tpu.memory_space<vmem>>, vector<8x1xf32>
    %cst_8 = arith.constant dense<0xFF800000> : vector<8xf32>
    %15 = vector.multi_reduction <maximumf>, %13, %cst_8 [1] : vector<8x8xf32> to vector<8xf32>
    %16 = vector.shape_cast %15 : vector<8xf32> to vector<8x1xf32>
    %17 = arith.maximumf %14, %16 : vector<8x1xf32>
    %18 = arith.subf %14, %17 : vector<8x1xf32>
    %19 = math.exp %18 : vector<8x1xf32>
    %20 = vector.broadcast %17 : vector<8x1xf32> to vector<8x8xf32>
    %21 = arith.subf %13, %20 : vector<8x8xf32>
    %22 = math.exp %21 : vector<8x8xf32>
    %c0_9 = arith.constant 0 : index
    %c0_10 = arith.constant 0 : index
    %23 = vector.load %arg12[%c0_9, %c0_10] : memref<8x1xf32, #tpu.memory_space<vmem>>, vector<8x1xf32>
    %24 = arith.mulf %19, %23 : vector<8x1xf32>
    %cst_11 = arith.constant dense<0.000000e+00> : vector<8xf32>
    %25 = vector.multi_reduction <add>, %22, %cst_11 [1] : vector<8x8xf32> to vector<8xf32>
    %26 = vector.shape_cast %25 : vector<8xf32> to vector<8x1xf32>
    %27 = arith.addf %24, %26 : vector<8x1xf32>
    %c0_12 = arith.constant 0 : index
    %c0_13 = arith.constant 0 : index
    %28 = vector.load %arg12[%c0_12, %c0_13] : memref<8x1xf32, #tpu.memory_space<vmem>>, vector<8x1xf32>
    tpu.vector_store %arg12[%c0_12, %c0_13], %27 {strides = array<i32>} : memref<8x1xf32, #tpu.memory_space<vmem>>, vector<8x1xf32>,
    %c0_14 = arith.constant 0 : index
    %c0_15 = arith.constant 0 : index
    %29 = vector.load %arg13[%c0_14, %c0_15] : memref<8x8xf32, #tpu.memory_space<vmem>>, vector<8x8xf32>
    %30 = vector.broadcast %19 : vector<8x1xf32> to vector<8x8xf32>
    %31 = arith.mulf %30, %29 : vector<8x8xf32>
    %cst_16 = arith.constant dense<0.000000e+00> : vector<8x8xf32>
    %32 = tpu.matmul %22, %11, %cst_16 {dimension_numbers = #tpu.dot_dimension_numbers<[1], [0], [0], [1], [0, 0, 1, 1], [], []>} : vector<8x8xf32>, vector<8x8xf32>, vector<8x8xf32> -> vector<8x8xf32>
    %33 = arith.addf %31, %32 : vector<8x8xf32>
    %c0_17 = arith.constant 0 : index
    %c0_18 = arith.constant 0 : index
    %34 = vector.load %arg13[%c0_17, %c0_18] : memref<8x8xf32, #tpu.memory_space<vmem>>, vector<8x8xf32>
    tpu.vector_store %arg13[%c0_17, %c0_18], %33 {strides = array<i32>} : memref<8x8xf32, #tpu.memory_space<vmem>>, vector<8x8xf32>,
    %c0_19 = arith.constant 0 : index
    %c0_20 = arith.constant 0 : index
    %35 = vector.load %arg11[%c0_19, %c0_20] : memref<8x1xf32, #tpu.memory_space<vmem>>, vector<8x1xf32>
    tpu.vector_store %arg11[%c0_19, %c0_20], %17 {strides = array<i32>} : memref<8x1xf32, #tpu.memory_space<vmem>>, vector<8x1xf32>,
    %c0_i32_21 = arith.constant 0 : i32
    %36 = arith.cmpi eq, %arg3, %c0_i32_21 : i32
    %37 = arith.extui %36 : i1 to i32
    %c0_i32_22 = arith.constant 0 : i32
    %38 = arith.cmpi ne, %37, %c0_i32_22 : i32
    scf.if %38 {
      %c0_23 = arith.constant 0 : index
      %c0_24 = arith.constant 0 : index
      %39 = vector.load %arg12[%c0_23, %c0_24] : memref<8x1xf32, #tpu.memory_space<vmem>>, vector<8x1xf32>
      %40 = tpu.reciprocal %39 : vector<8x1xf32> -> vector<8x1xf32>
      %c0_25 = arith.constant 0 : index
      %c0_26 = arith.constant 0 : index
      %41 = vector.load %arg13[%c0_25, %c0_26] : memref<8x8xf32, #tpu.memory_space<vmem>>, vector<8x8xf32>
      %42 = vector.broadcast %40 : vector<8x1xf32> to vector<8x8xf32>
      %43 = arith.mulf %41, %42 : vector<8x8xf32>
      %c0_27 = arith.constant 0 : index
      %c0_28 = arith.constant 0 : index
      %c0_29 = arith.constant 0 : index
      %c0_30 = arith.constant 0 : index
      %44 = vector.load %arg9[%c0_27, %c0_28, %c0_29, %c0_30] : memref<1x1x8x8xf32, #tpu.memory_space<vmem>>, vector<1x1x8x8xf32>
      %45 = vector.shape_cast %44 : vector<1x1x8x8xf32> to vector<8x8xf32>
      %46 = vector.shape_cast %43 : vector<8x8xf32> to vector<1x1x8x8xf32>
      tpu.vector_store %arg9[%c0_27, %c0_28, %c0_29, %c0_30], %46 {strides = array<i32>} : memref<1x1x8x8xf32, #tpu.memory_space<vmem>>, vector<1x1x8x8xf32>,
    } else {
    }
    return
  }
  func.func @transform_0(%arg0: i32, %arg1: i32, %arg2: i32, %arg3: i32) -> (i32, i32, i32) {
    %c0_i32 = arith.constant 0 : i32
    %c0_i32_0 = arith.constant 0 : i32
    return %arg0, %arg2, %c0_i32 : i32, i32, i32
  }
  func.func @transform_1(%arg0: i32, %arg1: i32, %arg2: i32, %arg3: i32) -> (i32, i32, i32) {
    %c0_i32 = arith.constant 0 : i32
    %0 = arith.cmpi eq, %arg2, %c0_i32 : i32
    %c0_i32_0 = arith.constant 0 : i32
    %1 = arith.select %0, %arg3, %c0_i32_0 : i32
    %c0_i32_1 = arith.constant 0 : i32
    %c0_i32_2 = arith.constant 0 : i32
    return %arg0, %1, %c0_i32_1 : i32, i32, i32
  }
  func.func @transform_2(%arg0: i32, %arg1: i32, %arg2: i32, %arg3: i32) -> (i32, i32, i32) {
    %c0_i32 = arith.constant 0 : i32
    %c0_i32_0 = arith.constant 0 : i32
    %c0_i32_1 = arith.constant 0 : i32
    return %arg1, %c0_i32, %c0_i32_0 : i32, i32, i32
  }
  func.func @transform_3(%arg0: i32, %arg1: i32, %arg2: i32, %arg3: i32) -> (i32, i32, i32) {
    %c0_i32 = arith.constant 0 : i32
    %c0_i32_0 = arith.constant 0 : i32
    %c0_i32_1 = arith.constant 0 : i32
    return %arg1, %c0_i32, %c0_i32_0 : i32, i32, i32
  }
  func.func @transform_4(%arg0: i32, %arg1: i32, %arg2: i32, %arg3: i32) -> (i32, i32, i32) {
    %c0_i32 = arith.constant 0 : i32
    %c0_i32_0 = arith.constant 0 : i32
    %c0_i32_1 = arith.constant 0 : i32
    return %arg1, %c0_i32, %c0_i32_0 : i32, i32, i32
  }
  func.func @transform_5(%arg0: i32, %arg1: i32, %arg2: i32, %arg3: i32) -> (i32, i32, i32, i32) {
    %c0_i32 = arith.constant 0 : i32
    %c0_i32_0 = arith.constant 0 : i32
    return %arg0, %arg1, %arg2, %c0_i32 : i32, i32, i32, i32
  }
}

</mosaic_0001>

<bundles_post_ra>
// kernel: tpu_custom_call.1
= control target key start
LH: loop header
LB: loop body
LE: loop exit
PB: predicated region body
PF: predicated region fallthrough
CT: control target
= control target key end

     0   :  { %s1138_s0 = inlined_call_operand.vmem [shape: f32[2,8,32], index: 0, kind: input, shape index: {}]   ;;  %s1139_s1 = inlined_call_operand.vmem [shape: f32[2,8,32], index: 1, kind: input, shape index: {}]   ;;  %s1140_s2 = inlined_call_operand.vmem [shape: f32[4,32,8], index: 2, kind: input, shape index: {}]   ;;  %s1141_s3 = inlined_call_operand.vmem [shape: f32[4,32,8], index: 3, kind: input, shape index: {}]   ;;  %s1142_s4 = inlined_call_operand.vmem [shape: f32[4,32,8], index: 4, kind: input, shape index: {}]   ;;  %s1143_s5 = inlined_call_operand.hbm [shape: f32[2,4,8,8], index: 5, kind: output, shape index: {}]  }
   0x1   :  { %1144 = sst [smem:[#allocation11_spill]] %s1140_s2 }
   0x2   :  { %10 = vsyncpa [#allocation9], 0 }
   0x3   :  { %12 = vsyncpa [#allocation9 + $0x1], 0  ;;  %s981_s18 = smov 0   ;;  %s983_s19 = smov 0  }
   0x4   :  { %s985_s20 = smov 0   ;;  %s987_s21 = smov 0  }
   0x5   :  { %s989_s22 = smov 0   ;;  %s991_s23 = smov 0  }
   0x6   :  { %s993_s24 = smov 0   ;;  %s995_s25 = smov 0  }
   0x7 LB: > { %s741_s26 = sadd.s32 4294967295, %s946_s25   ;;  %s742_s27 = sadd.s32 4294967294, %s946_s25   ;;  %s946_s25 = sphi %s995_s25, %s18_s25   ;;  %s942_s24 = sphi %s993_s24, %s1154_s24   ;;  %s938_s23 = sphi %s991_s23, %s1153_s23   ;;  %s934_s22 = sphi %s989_s22, %s1152_s22   ;;  %s930_s21 = sphi %s987_s21, %s1151_s21   ;;  %s926_s20 = sphi %s985_s20, %s1150_s20   ;;  %s922_s19 = sphi %s983_s19, %s1149_s19   ;;  %s918_s18 = sphi %s981_s18, %s1148_s18  }
   0x8   : > { %s40_s28 = sadd.s32 1, %s938_s23  ;;  %s44_s29 = sadd.s32 1, %s942_s24 }
   0x9   : > { %p42_p0 = scmp.ge.s32.totalorder %s40_s28, 4  ;;  %p203_p1 = scmp.ne.s32.totalorder %s926_s20, %s922_s19 }
   0xa   : > { %p204_p2 = scmp.eq.s32.totalorder %s741_s26, 7  ;;  %p209_p5 = scmp.ne.s32.totalorder %s922_s19, %s918_s18 }
   0xb   : > { %s1156_s28 = smov (%p42_p0, %s40_s28), 0  ;;  %s1158_s29 = smov (!%p42_p0, %s44_s29), %s942_s24 }
   0xc   : > { %s187_s30 = ssub.s32 %s938_s23, %s1156_s28  ;;  %p1032_p3 = por %p204_p2, %p203_p1 }
   0xd   : > { %p46_p4 = scmp.ge.s32.totalorder %s1158_s29, 2  ;;  %p210_p6 = scmp.eq.s32.totalorder %s742_s27, 7 }
   0xe   : > { %p745_p7 = scmp.ge.s32.totalorder %s946_s25, 1  ;;  %p276_p9 = scmp.lt.s32.totalorder %s946_s25, 9 }
   0xf   : > { %s1160_s29 = smov (%p46_p4, %s1158_s29), 0  ;;  %p1041_p8 = por %p210_p6, %p209_p5 }
  0x10   : > { %s186_s8 = ssub.s32 %s942_s24, %s1160_s29  ;;  %s193_s9 = sadd.s32 1, %s926_s20 }
  0x11   : > { %s188_s10 = sor.u32 %s187_s30, %s186_s8  ;;  %p277_p10 = pnand %p745_p7, %p276_p9 }
  0x12   : > { %p191_p11 = scmp.eq.s32.totalorder %s188_s10, 0  ;;  %p348_p12 = scmp.lt.s32.totalorder (!%p277_p10), %s930_s21, 3 }
  0x13   : > { %280 = sbr.rel (%p277_p10) target bundleno = 793 (0x319), region = 40  ;;  %p330_p13 = scmp.lt.s32.totalorder (!%p277_p10), %s934_s22, 1 }
  0x14   : > { %s1050_s11 = scalar_select %p191_p11, %s926_s20, %s193_s9  }
  0x15   : > { %s1147_s2 = sld [smem:[#allocation11_spill]] (!%p277_p10)  ;;  %s327_s26 = sand.u32 (!%p277_p10), 1, %s922_s19  }
  0x18   : > { %s349_s12 = scalar_select %p348_p12, %s930_s21, 3  ;;  %vm373_vm0 = vcmask 261120   ;;  %vm398_vm1 = vcmask 64512   ;;  %vm461_vm2 = vcmask 7168   ;;  %v948_v16 = vmov -inf  }
  0x19   : > { %s331_s13 = scalar_select %p330_p13, %s934_s22, 1  ;;  %462 = vst.msk [vmem:[#allocation3] sm:$0xff] %vm461_vm2, %v948_v16  ;;  %v949_v21 = vmov 0   ;;  %v950_v22 = vmov 0.0  }
  0x1a   : > { %s1056_s14 = sshll.u32 %s349_s12, 5  ;;  %843 = vset.pattern.permute.xlu0 %v949_v21  ;;  %844 = vset.pattern.permute.xlu1 %v949_v21  ;;  %463 = vst.msk [vmem:[#allocation4] sm:$0xff] %vm461_vm2, %v950_v22 }
  0x1b   : > { %s352_s17 = scalar_lea.vmem %s1147_s2, %s1056_s14  ;;  %s357_s30 = scalar_lea.vmem %s1141_s3, %s1056_s14  ;;  %845 = vset.pattern.permute.xlu2 %v949_v21  ;;  %464 = vst.msk [vmem:[#allocation5] sm:$0xff] %vm398_vm1, %v950_v22 }
  0x1c   : > { %v434_v0 = vld [vmem:[%s352_s17 + $0x18] sm:$0xff]  ;;  %v433_v1 = vld [vmem:[%s352_s17 + $0x10] sm:$0xff]  ;;  %s747_s8 = sshll.u32 %s331_s13, 3  ;;  %v432_v4 = vld [vmem:[%s352_s17 + $0x8] sm:$0xff] }
  0x1d   : > { %v372_v2 = vld [vmem:[%s357_s30 + $0x18] sm:$0xff]  ;;  %451 = vmatpush.msra.mxu2 %v434_v0  ;;  %v371_v3 = vld [vmem:[%s357_s30 + $0x10] sm:$0xff]  ;;  %v370_v5 = vld [vmem:[%s357_s30 + $0x8] sm:$0xff]  ;;  %s336_s12 = scalar_lea.vmem %s1138_s0, %s747_s8  ;;  %s345_s2 = scalar_lea.vmem %s1139_s1, %s747_s8 }
  0x1e   : > { %389 = vmatpush.msra.mxu0 %v372_v2  ;;  %v431_v6 = vld [vmem:[%s352_s17] sm:$0xff]  ;;  %s362_s17 = scalar_lea.vmem %s1142_s4, %s1056_s14  ;;  %s762_s14 = sshll.u32 %s934_s22, 2 }
  0x1f   : > { %452 = vmatpush.msra.mxu2 %v433_v1  ;;  %v369_v7 = vld [vmem:[%s357_s30] sm:$0xff]  ;;  %v403_v14 = vld [vmem:[%s362_s17 + $0x18] sm:$0xff]  ;;  %v402_v15 = vld [vmem:[%s362_s17 + $0x10] sm:$0xff]  ;;  %s593_s27 = sadd.s32 %s930_s21, %s762_s14  ;;  %s746_s30 = sshll.u32 %s327_s26, 3 }
  0x20   : > { %390 = vmatpush.msra.mxu0 %v371_v3  ;;  %v430_v8 = vld [vmem:[%s336_s12] sm:$0xff]  ;;  %416 = vmatpush.msra.mxu1 %v403_v14  ;;  %v401_v17 = vld [vmem:[%s362_s17 + $0x8] sm:$0xff]  ;;  %s763_s8 = sshll.u32 %s593_s27, 3  ;;  %s329_s15 = scalar_lea.vmem [#allocation8], %s746_s30 }
  0x21   : > { %453 = vmatpush.msra.mxu2 %v432_v4  ;;  %v367_v9 = vld [vmem:[%s345_s2] sm:$0xff]  ;;  %v498_v23 = vld [vmem:[#allocation3] sm:$0xff]  ;;  %v514_v36 = vld [vmem:[#allocation4] sm:$0xff]  ;;  %s595_s12 = scalar_lea.hbm %s1143_s5, %s763_s8  ;;  %s597_s16 = sshll.u32 %s329_s15, 4  ;;  %s598_s16 = int_to_ptr.vmem [resolvable:$true] %s597_s16 }
  0x22   : > { %391 = vmatpush.msra.mxu0 %v370_v5  ;;  %417 = vmatpush.msra.mxu1 %v402_v15  ;;  %v400_v18 = vld [vmem:[%s362_s17] sm:$0xff]  ;;  %v522_v45 = vld [vmem:[#allocation5] sm:$0xff]  ;;  %s599_s2 = sshll.u32 %s595_s12, 4  ;;  %s582_s22 = scalar_lea.sflag [#allocation9], %s327_s26  ;;  %s600_s2 = int_to_ptr.hbm [resolvable:$true] %s599_s2 }
  0x23   : > { %454 = vmatpush.msra.mxu2 %v431_v6  ;;  %s866_s13 = sshra.s32 %s600_s2, 4  ;;  %s872_s27 = scalar_lea.hbm %s1143_s5, 64  ;;  %s867_s13 = int_to_ptr.hbm [resolvable:$true] %s866_s13 }
  0x24   : > { %392 = vmatpush.msra.mxu0 %v369_v7  ;;  %757 = vmatmul.msk.f32.vlgmr.msra.gmra.mxu2 %vm373_vm0, %v430_v8  ;;  %s868_s21 = scalar_lea.hbm %s867_s13, 8  ;;  %p873_p4 = scmp.lt.s32.totalorder %s867_s13, %s1143_s5 }
  0x25   : > { %755 = vmatmul.msk.f32.vlgmr.msra.gmra.mxu0 %vm373_vm0, %v367_v9  ;;  %418 = vmatpush.msra.mxu1 %v401_v17  ;;  %p869_p0 = scmp.ne.s32.totalorder %s867_s13, %s868_s21  ;;  %p874_p5 = scmp.lt.s32.totalorder %s872_s27, %s868_s21 }
  0x27   : > { %419 = vmatpush.msra.mxu1 %v400_v18  ;;  %p870_p1 = pnand %p869_p0, %p1032_p3  ;;  %p875_p6 = por %p874_p5, %p873_p4 }
  0x28   : > { %756 = vmatmul.msk.f32.vlgmr.msra.gmra.mxu1 %vm373_vm0, %v367_v9 }
  0x29   : > { %p871_p2 = pneg %p870_p1 }
  0x2b   : > { %p876_p7 = pnand %p875_p6, %p871_p2 }
  0xa2   : > { %v394_v10 = vpop.f32.mrf.mxu0 }
  0xa3   : > { %399 = vst.msk [vmem:[#allocation6] sm:$0xff] %vm398_vm1, %v394_v10 }
  0xa5   : > { %v421_v27 = vpop.f32.mrf.mxu1 }
  0xa6   : > { %425 = vst.msk [vmem:[#allocation7] sm:$0xff] %vm398_vm1, %v421_v27 }
  0xa7   : > { %v456_v11 = vpop.f32.mrf.mxu2 }
  0xa8   : > { %460 = vst.msk [vmem:[#allocation2] sm:$0xff] %vm398_vm1, %v456_v11 }
  0xaa   : > { %v467_v12 = vld [vmem:[#allocation6] sm:$0xff] }
  0xab   : > { %758 = vmatpush.xpose.msk.msra.mxu3 %vm398_vm1, %v467_v12 }
  0xad   : > { %v469_v28 = vld [vmem:[#allocation7] sm:$0xff] }
  0xaf   : > { %v470_v13 = vld [vmem:[#allocation2] sm:$0xff]  ;;  %547 = vmatpush.msrb.mxu3 %v469_v28 }
  0xb0   : > { %759 = vmatmul.msk.f32.vlgmr.msra.gmra.mxu3 %vm398_vm1, %v470_v13 }
 0x133   : > { %v495_v19 = vpop.f32.mrf.mxu3 }
 0x134   : > { %v499_v20 = vsel %vm398_vm1, %v495_v19, -inf }
 0x135   : > { %500 = vmax.xlane.f32.xlu0 %v499_v20 }
 0x1a8   : > { %v501_v24 = vpop.xlane.xlu0 %500 }
 0x1a9   : > { %v502_v25 = vmax.f32 %v498_v23, %v501_v24 }
 0x1ab   : > { %v503_v26 = vsub.f32 %v498_v23, %v502_v25  ;;  %554 = vst.msk [vmem:[#allocation3] sm:$0xff] %vm461_vm2, %v502_v25  ;;  %508 = vperm.xlu0 %843, %v502_v25  }
 0x1ad   : > { %v504_v34 = vmul.f32 1.442695, %v503_v26 }
 0x21d   : > { %v509_v29 = vpop.permute.xlu0 %508 }
 0x21e   : > { %v511_v30 = vsub.f32 %v495_v19, %v509_v29 }
 0x220   : > { %v512_v31 = vmul.f32 1.442695, %v511_v30 }
 0x222   : > { %846 = vpow2.f32 %v512_v31 }
 0x223   : > { %848 = vpow2.f32 %v504_v34 }
 0x228   : > { %v847_v32 = vpop.eup %846 }
 0x229   : > { %760 = vmatmul.msk.f32.vlgmr.msrb.gmra.mxu3 %vm398_vm1, %v847_v32  ;;  %v516_v33 = vsel %vm398_vm1, %v847_v32, 0.0  ;;  %v849_v35 = vpop.eup %848 }
 0x22a   : > { %517 = vadd.xlane.f32.xlu1 %v516_v33  ;;  %v515_v37 = vmul.f32 %v849_v35, %v514_v36 }
 0x243   : > { %525 = vperm.xlu1 %844, %v849_v35  }
 0x29d   : > { %v518_v38 = vpop.xlane.xlu1 %517 }
 0x29e   : > { %v519_v39 = vadd.f32 %v518_v38, %v515_v37 }
 0x2a0   : > { %521 = vst.msk [vmem:[#allocation4] sm:$0xff] %vm461_vm2, %v519_v39 }
 0x2a7   : > { %v558_v40 = vld [vmem:[#allocation4] sm:$0xff] }
 0x2a8   : > { %850 = vrcp.f32 %v558_v40  ;;  %v570_v44 = vand.u32 2147483648, %v558_v40  ;;  %v568_v47 = vand.u32 2147483647, %v558_v40  ;;  %vm564_vm4 = vweird.f32 %v558_v40 }
 0x2aa   : > { %v571_v51 = vor.u32 1.1754944e-38, %v570_v44  ;;  %vm569_vm6 = vcmp.eq.f32.partialorder %v568_v47, 8.507059e+37 }
 0x2ac   : > { %v549_v52 = vpop.f32.mrf.mxu3 }
 0x2ae   : > { %v851_v41 = vpop.eup %850 }
 0x2af   : > { %v560_v42 = vmul.f32 %v851_v41, %v558_v40  ;;  %vm565_vm3 = vweird.f32 %v851_v41 }
 0x2b0   : > { %vm566_vm5 = vmor %vm564_vm4, %vm565_vm3 }
 0x2b1   : > { %v561_v43 = vsub.f32 1.0, %v560_v42 }
 0x2b3   : > { %v562_v46 = vmul.f32 %v851_v41, %v561_v43 }
 0x2b5   : > { %v526_v48 = vpop.permute.xlu1 %525  ;;  %v563_v49 = vadd.f32 %v851_v41, %v562_v46 }
 0x2b6   : > { %v528_v50 = vmul.f32 %v526_v48, %v522_v45 }
 0x2b7   : > { %v567_v53 = vsel %vm566_vm5, %v851_v41, %v563_v49 }
 0x2b8   : > { %v552_v54 = vadd.f32 %v549_v52, %v528_v50  ;;  %v572_v55 = vsel %vm569_vm6, %v571_v51, %v567_v53 }
 0x2b9   : > { %576 = vperm.xlu2 %845, %v572_v55  }
 0x2ba   : > { %553 = vst.msk [vmem:[#allocation5] sm:$0xff] %vm398_vm1, %v552_v54 }
 0x2c1   : > { %v573_v56 = vld [vmem:[#allocation5] sm:$0xff] }
 0x313   : > { %v577_v57 = vpop.permute.xlu2 %576 }
 0x314   : > { %v579_v58 = vmul.f32 %v577_v57, %v573_v56 }
 0x316   : > { %580 = vst.msk [vmem:[%s329_s15] sm:$0xff] %vm398_vm1, %v579_v58 }
 0x317   : > { %879 = shalt.err (!%p876_p7)
}
 0x318   : > { %769 = dma.vmem_to_hbm [thread:$0]  (%p1032_p3), %s598_s16, 128, %s600_s2, %s582_s22  }
 0x319 PF: > { %p775_p9 = scmp.ge.s32.totalorder %s946_s25, 2  ;;  %s611_s26 = sand.u32 1, %s918_s18  }
 0x31a   : > { %s612_s9 = scalar_lea.sflag [#allocation9], %s611_s26 }
 0x31b   : > { %p772_p10 = pnand %p775_p9, %p1041_p8 }
 0x31d   : > { %p773_p11 = pneg %p772_p10 }
 0x31f   : > { %913 = dma.done.wait (%p773_p11), %s612_s9, 128  }
 0x320   : > { %915 = vsyncadd (%p773_p11), %s612_s9, 4294967168  ;;  %s18_s25 = sadd.s32 1, %s946_s25   ;;  %s1148_s18 = smov %s922_s19 }
 0x321   : > { %p15_p12 = scmp.ge.s32.totalorder %s18_s25, 10   ;;  %s1149_s19 = smov %s926_s20 }
 0x322   : > { %s1150_s20 = smov %s1050_s11  ;;  %s1151_s21 = smov %s938_s23 }
 0x323   : > { %s1152_s22 = smov %s942_s24  ;;  %s1153_s23 = smov %s1156_s28 }
 0x324   : > { %s1154_s24 = smov %s1160_s29  ;;  %17 = sbr.rel (!%p15_p12) target bundleno = 7 (0x7), region = 103 }
 0x329   :  { %618 = vsyncpa [#allocation9], 1 }
 0x32a   :  { %620 = vsyncpa [#allocation9 + $0x1], 1 }

</bundles_post_ra>
